<compile_context>
chip_gen: v6e
topology: v6e:2x2x1
jax: 0.10.0
libtpu: 0.0.40
codegen_flags: <defaults>
</compile_context>

<pallas_src>
import jax
import jax.numpy as jnp
from jax.experimental import pallas as pl
from jax.experimental.pallas import tpu as pltpu


TB = 256          # batch rows per grid step (fills MXU M on v6e/v7x)
H = 256           # hidden width
IN_FEATURES = 8
LANE = 128        # minimum lane-dense output width


def dqn_kernel(x_ref, w1_ref, b1_ref, w2_ref, b2_ref, w3_ref, b3_ref, o_ref):
    # hidden layer 1: relu(x @ W1 + b1)   (bf16 inputs, f32 accumulation)
    h1 = jnp.dot(x_ref[...], w1_ref[...], preferred_element_type=jnp.float32)
    h1 = jnp.maximum(h1 + b1_ref[...], 0.0).astype(jnp.bfloat16)
    # hidden layer 2: relu(h1 @ W2 + b2)
    h2 = jnp.dot(h1, w2_ref[...], preferred_element_type=jnp.float32)
    h2 = jnp.maximum(h2 + b2_ref[...], 0.0).astype(jnp.bfloat16)
    # output layer: h2 @ W3 + b3 (no activation), lane-padded to 128 wide
    o_ref[...] = (
        jnp.dot(h2, w3_ref[...], preferred_element_type=jnp.float32) + b3_ref[...]
    )


def dqn_forward(x, params):
    """x: (B, 8) float32.  params: dict of W1,b1,W2,b2,W3,b3 (W as (in, out))."""
    w1, b1 = params["w1"], params["b1"]
    w2, b2 = params["w2"], params["b2"]
    w3, b3 = params["w3"], params["b3"]
    B = x.shape[0]
    num_actions = w3.shape[1]

    # --- lane-pad the output layer to a full 128-wide tile ---------------
    n_pad = max(LANE, pl.cdiv(num_actions, LANE) * LANE)
    w3p = jnp.zeros((H, n_pad), jnp.float32).at[:, :num_actions].set(w3)
    b3p = jnp.zeros((1, n_pad), jnp.float32).at[:, :num_actions].set(b3)

    # --- pad the batch to a multiple of TB so every tile is full ---------
    b_pad = pl.cdiv(B, TB) * TB
    xp = x
    if b_pad != B:
        xp = jnp.zeros((b_pad, IN_FEATURES), x.dtype).at[:B, :].set(x)

    # --- bf16 for weights/activations, f32 biases & accumulation ---------
    xp = xp.astype(jnp.bfloat16)
    w1b, w2b, w3b = (w.astype(jnp.bfloat16) for w in (w1, w2, w3p))

    grid = (b_pad // TB,)
    resident = lambda shape: pl.BlockSpec(shape, lambda i: (0, 0))

    out = pl.pallas_call(
        dqn_kernel,
        out_shape=jax.ShapeDtypeStruct((b_pad, n_pad), jnp.float32),
        grid=grid,
        in_specs=[
            pl.BlockSpec((TB, IN_FEATURES), lambda i: (i, 0)),  # x tile (streamed)
            resident((IN_FEATURES, H)),                         # W1 (VMEM-resident)
            resident((1, H)),                                   # b1
            resident((H, H)),                                   # W2
            resident((1, H)),                                   # b2
            resident((H, n_pad)),                               # W3 (lane-padded)
            resident((1, n_pad)),                               # b3 (lane-padded)
        ],
        out_specs=pl.BlockSpec((TB, n_pad), lambda i: (i, 0)),
        compiler_params=pltpu.CompilerParams(
            dimension_semantics=("parallel",),
            vmem_limit_bytes=32 * 1024 * 1024,
        ),
    )(xp, w1b, b1, w2b, b2, w3b, b3p)

    return out[:B, :num_actions]


def init_params(key, num_actions):
    """Deterministic synthetic init mimicking PyTorch Linear's U(-1/sqrt(fan_in), +)."""
    def linear(key, fan_in, fan_out):
        kw, kb = jax.random.split(key)
        bound = 1.0 / jnp.sqrt(float(fan_in))
        w = jax.random.uniform(kw, (fan_in, fan_out), jnp.float32, -bound, bound)
        b = jax.random.uniform(kb, (1, fan_out), jnp.float32, -bound, bound)
        return w, b

    k1, k2, k3 = jax.random.split(key, 3)
    w1, b1 = linear(k1, IN_FEATURES, H)
    w2, b2 = linear(k2, H, H)
    w3, b3 = linear(k3, H, num_actions)
    return {"w1": w1, "b1": b1, "w2": w2, "b2": b2, "w3": w3, "b3": b3}


def dqn_reference_f32(x, params):
    h = jnp.maximum(x @ params["w1"] + params["b1"], 0.0)
    h = jnp.maximum(h @ params["w2"] + params["b2"], 0.0)
    return h @ params["w3"] + params["b3"]


def dqn_reference_bf16(x, params):
    """Mirrors the kernel's bf16-input / f32-accumulation casting exactly."""
    xb = x.astype(jnp.bfloat16)
    w1b = params["w1"].astype(jnp.bfloat16)
    w2b = params["w2"].astype(jnp.bfloat16)
    w3b = params["w3"].astype(jnp.bfloat16)
    h = jnp.dot(xb, w1b, preferred_element_type=jnp.float32) + params["b1"]
    h = jnp.maximum(h, 0.0).astype(jnp.bfloat16)
    h = jnp.dot(h, w2b, preferred_element_type=jnp.float32) + params["b2"]
    h = jnp.maximum(h, 0.0).astype(jnp.bfloat16)
    return jnp.dot(h, w3b, preferred_element_type=jnp.float32) + params["b3"]


if __name__ == "__main__":
    key = jax.random.PRNGKey(0)
    k_params, k_x = jax.random.split(key)

    num_actions = 4
    batch = 200  # deliberately NOT a multiple of TB to exercise batch padding
    params = init_params(k_params, num_actions)
    x = jax.random.normal(k_x, (batch, IN_FEATURES), jnp.float32)

    out = dqn_forward(x, params)
    out = jax.block_until_ready(out)
    assert out.shape == (batch, num_actions), out.shape

    # tight check vs. a reference with identical bf16 casting
    ref_bf16 = dqn_reference_bf16(x, params)
    assert jnp.allclose(out, ref_bf16, atol=2e-3, rtol=2e-3), "mismatch vs bf16 reference"

    # loose check vs. full-f32 reference (bf16 weight quantization noise only)
    ref_f32 = dqn_reference_f32(x, params)
    assert jnp.allclose(out, ref_f32, atol=5e-2, rtol=5e-2), "mismatch vs f32 reference"

    print("KERNEL_OK")
</pallas_src>

<mosaic_0001>
module attributes {stable_mosaic.version = 11 : i64} {
  func.func @dqn_kernel(%arg0: i32, %arg1: memref<256x8xbf16, #tpu.memory_space<vmem>>, %arg2: memref<8x256xbf16, #tpu.memory_space<vmem>>, %arg3: memref<1x256xf32, #tpu.memory_space<vmem>>, %arg4: memref<256x256xbf16, #tpu.memory_space<vmem>>, %arg5: memref<1x256xf32, #tpu.memory_space<vmem>>, %arg6: memref<256x128xbf16, #tpu.memory_space<vmem>>, %arg7: memref<1x128xf32, #tpu.memory_space<vmem>>, %arg8: memref<256x128xf32, #tpu.memory_space<vmem>>) attributes {dimension_semantics = [#tpu.dimension_semantics<parallel>], iteration_bounds = array<i64: 1>, scalar_prefetch = 0 : i64, scratch_operands = 0 : i64, tpu.core_type = #tpu.core_type<tc>, window_params = [{transform_indices = @transform_0, window_bounds = array<i64: 256, 8>}, {pipeline_mode = #tpu.pipeline_mode<synchronous>, transform_indices = @transform_1, window_bounds = array<i64: 8, 256>}, {pipeline_mode = #tpu.pipeline_mode<synchronous>, transform_indices = @transform_2, window_bounds = array<i64: 1, 256>}, {pipeline_mode = #tpu.pipeline_mode<synchronous>, transform_indices = @transform_3, window_bounds = array<i64: 256, 256>}, {pipeline_mode = #tpu.pipeline_mode<synchronous>, transform_indices = @transform_4, window_bounds = array<i64: 1, 256>}, {pipeline_mode = #tpu.pipeline_mode<synchronous>, transform_indices = @transform_5, window_bounds = array<i64: 256, 128>}, {pipeline_mode = #tpu.pipeline_mode<synchronous>, transform_indices = @transform_6, window_bounds = array<i64: 1, 128>}, {transform_indices = @transform_7, window_bounds = array<i64: 256, 128>}]} {
    %c0 = arith.constant 0 : index
    %c0_0 = arith.constant 0 : index
    %0 = vector.load %arg1[%c0, %c0_0] : memref<256x8xbf16, #tpu.memory_space<vmem>>, vector<256x8xbf16>
    %c0_1 = arith.constant 0 : index
    %c0_2 = arith.constant 0 : index
    %1 = vector.load %arg2[%c0_1, %c0_2] : memref<8x256xbf16, #tpu.memory_space<vmem>>, vector<8x256xbf16>
    %cst = arith.constant dense<0.000000e+00> : vector<256x256xf32>
    %2 = tpu.matmul %0, %1, %cst {dimension_numbers = #tpu.dot_dimension_numbers<[1], [0], [0], [1], [0, 0, 1, 1], [], []>} : vector<256x8xbf16>, vector<8x256xbf16>, vector<256x256xf32> -> vector<256x256xf32>
    %c0_3 = arith.constant 0 : index
    %c0_4 = arith.constant 0 : index
    %3 = vector.load %arg3[%c0_3, %c0_4] : memref<1x256xf32, #tpu.memory_space<vmem>>, vector<1x256xf32>
    %4 = vector.broadcast %3 : vector<1x256xf32> to vector<256x256xf32>
    %5 = arith.addf %2, %4 : vector<256x256xf32>
    %cst_5 = arith.constant 0.000000e+00 : f32
    %6 = vector.broadcast %cst_5 : f32 to vector<256x256xf32>
    %7 = arith.maximumf %5, %6 : vector<256x256xf32>
    %8 = arith.truncf %7 : vector<256x256xf32> to vector<256x256xbf16>
    %c0_6 = arith.constant 0 : index
    %c0_7 = arith.constant 0 : index
    %9 = vector.load %arg4[%c0_6, %c0_7] : memref<256x256xbf16, #tpu.memory_space<vmem>>, vector<256x256xbf16>
    %cst_8 = arith.constant dense<0.000000e+00> : vector<256x256xf32>
    %10 = tpu.matmul %8, %9, %cst_8 {dimension_numbers = #tpu.dot_dimension_numbers<[1], [0], [0], [1], [0, 0, 1, 1], [], []>} : vector<256x256xbf16>, vector<256x256xbf16>, vector<256x256xf32> -> vector<256x256xf32>
    %c0_9 = arith.constant 0 : index
    %c0_10 = arith.constant 0 : index
    %11 = vector.load %arg5[%c0_9, %c0_10] : memref<1x256xf32, #tpu.memory_space<vmem>>, vector<1x256xf32>
    %12 = vector.broadcast %11 : vector<1x256xf32> to vector<256x256xf32>
    %13 = arith.addf %10, %12 : vector<256x256xf32>
    %cst_11 = arith.constant 0.000000e+00 : f32
    %14 = vector.broadcast %cst_11 : f32 to vector<256x256xf32>
    %15 = arith.maximumf %13, %14 : vector<256x256xf32>
    %16 = arith.truncf %15 : vector<256x256xf32> to vector<256x256xbf16>
    %c0_12 = arith.constant 0 : index
    %c0_13 = arith.constant 0 : index
    %17 = vector.load %arg6[%c0_12, %c0_13] : memref<256x128xbf16, #tpu.memory_space<vmem>>, vector<256x128xbf16>
    %cst_14 = arith.constant dense<0.000000e+00> : vector<256x128xf32>
    %18 = tpu.matmul %16, %17, %cst_14 {dimension_numbers = #tpu.dot_dimension_numbers<[1], [0], [0], [1], [0, 0, 1, 1], [], []>} : vector<256x256xbf16>, vector<256x128xbf16>, vector<256x128xf32> -> vector<256x128xf32>
    %c0_15 = arith.constant 0 : index
    %c0_16 = arith.constant 0 : index
    %19 = vector.load %arg7[%c0_15, %c0_16] : memref<1x128xf32, #tpu.memory_space<vmem>>, vector<1x128xf32>
    %20 = vector.broadcast %19 : vector<1x128xf32> to vector<256x128xf32>
    %21 = arith.addf %18, %20 : vector<256x128xf32>
    %c0_17 = arith.constant 0 : index
    %c0_18 = arith.constant 0 : index
    %22 = vector.load %arg8[%c0_17, %c0_18] : memref<256x128xf32, #tpu.memory_space<vmem>>, vector<256x128xf32>
    tpu.vector_store %arg8[%c0_17, %c0_18], %21 {strides = array<i32>} : memref<256x128xf32, #tpu.memory_space<vmem>>, vector<256x128xf32>,
    return
  }
  func.func @transform_0(%arg0: i32) -> (i32, i32) {
    %c0_i32 = arith.constant 0 : i32
    %c0_i32_0 = arith.constant 0 : i32
    return %arg0, %c0_i32 : i32, i32
  }
  func.func @transform_1(%arg0: i32) -> (i32, i32) {
    %c0_i32 = arith.constant 0 : i32
    %c0_i32_0 = arith.constant 0 : i32
    %c0_i32_1 = arith.constant 0 : i32
    return %c0_i32, %c0_i32_0 : i32, i32
  }
  func.func @transform_2(%arg0: i32) -> (i32, i32) {
    %c0_i32 = arith.constant 0 : i32
    %c0_i32_0 = arith.constant 0 : i32
    %c0_i32_1 = arith.constant 0 : i32
    return %c0_i32, %c0_i32_0 : i32, i32
  }
  func.func @transform_3(%arg0: i32) -> (i32, i32) {
    %c0_i32 = arith.constant 0 : i32
    %c0_i32_0 = arith.constant 0 : i32
    %c0_i32_1 = arith.constant 0 : i32
    return %c0_i32, %c0_i32_0 : i32, i32
  }
  func.func @transform_4(%arg0: i32) -> (i32, i32) {
    %c0_i32 = arith.constant 0 : i32
    %c0_i32_0 = arith.constant 0 : i32
    %c0_i32_1 = arith.constant 0 : i32
    return %c0_i32, %c0_i32_0 : i32, i32
  }
  func.func @transform_5(%arg0: i32) -> (i32, i32) {
    %c0_i32 = arith.constant 0 : i32
    %c0_i32_0 = arith.constant 0 : i32
    %c0_i32_1 = arith.constant 0 : i32
    return %c0_i32, %c0_i32_0 : i32, i32
  }
  func.func @transform_6(%arg0: i32) -> (i32, i32) {
    %c0_i32 = arith.constant 0 : i32
    %c0_i32_0 = arith.constant 0 : i32
    %c0_i32_1 = arith.constant 0 : i32
    return %c0_i32, %c0_i32_0 : i32, i32
  }
  func.func @transform_7(%arg0: i32) -> (i32, i32) {
    %c0_i32 = arith.constant 0 : i32
    %c0_i32_0 = arith.constant 0 : i32
    return %arg0, %c0_i32 : i32, i32
  }
}

</mosaic_0001>

<bundles_post_ra>
// kernel: tpu_custom_call.1
= control target key start
LH: loop header
LB: loop body
LE: loop exit
PB: predicated region body
PF: predicated region fallthrough
CT: control target
= control target key end

     0   :  { %12 = vsyncpa [#allocation3], 0  ;;  %s2123_s0 = inlined_call_operand.vmem [shape: bf16[256,8], index: 0, kind: input, shape index: {}]   ;;  %s2124_s1 = inlined_call_operand.vmem [shape: bf16[8,256], index: 1, kind: input, shape index: {}]   ;;  %s2125_s2 = inlined_call_operand.vmem [shape: f32[1,256], index: 2, kind: input, shape index: {}]   ;;  %s2126_s3 = inlined_call_operand.hbm [shape: bf16[256,256], index: 3, kind: input, shape index: {}]   ;;  %s2127_s4 = inlined_call_operand.vmem [shape: f32[1,256], index: 4, kind: input, shape index: {}]   ;;  %s2128_s5 = inlined_call_operand.vmem [shape: bf16[256,128], index: 5, kind: input, shape index: {}]   ;;  %s2129_s6 = inlined_call_operand.vmem [shape: f32[1,128], index: 6, kind: input, shape index: {}]   ;;  %s2130_s7 = inlined_call_operand.hbm [shape: f32[256,128], index: 7, kind: output, shape index: {}]  }
   0x1   :  { %13 = vsyncpa [#allocation4], 0  ;;  %s1684_s24 = smov [#allocation2]  }
   0x2   :  { %s25_s25 = sshll.u32 %s1684_s24, 4  ;;  %s26_s25 = int_to_ptr.vmem [resolvable:$true] %s25_s25 }
   0x3   :  { %s1648_s26 = scalar_lea.vmem %s26_s25, 4096  ;;  %p1653_p1 = scmp.lt.s32.totalorder %s26_s25, %s26_s25 }
   0x4   :  { %p1649_p0 = scmp.ne.s32.totalorder %s26_s25, %s1648_s26  ;;  %p1654_p2 = scmp.lt.s32.totalorder %s1648_s26, %s1648_s26 }
   0x6   :  { %p1655_p3 = por %p1654_p2, %p1653_p1 }
   0x8   :  { %p1656_p4 = pnand %p1655_p3, %p1649_p0 }
   0xa   :  { %1659 = shalt.err (!%p1656_p4)
}
   0xb   :  { %s1685_s27 = smov 128   ;;  %s1686_s28 = smov 8  }
   0xc   :  { %31 = dma.hbm_to_vmem [thread:$0]  %s2126_s3, 4096, %s26_s25, [#allocation3], %s1685_s27, %s1685_s27, %s1686_s28  }
   0xd   :  { %1680 = dma.done.wait [#allocation3], 4096  }
   0xe   :  { %1681 = vsyncadd [#allocation3], 4294963200  ;;  %v1687_v0 = vmov 0   ;;  %v74_v1 = vld [vmem:[%s2124_s1] sm:$0xff]  ;;  %vm221_vm0 = vcmask 1043456   ;;  %vm172_vm1 = vcmask 64512   ;;  %v77_v53 = vlaneseq }
   0xf   :  { %260 = vmatprep.mubr.bf16.mxu0 %v1687_v0  ;;  %340 = vmatprep.mubr.bf16.mxu1 %v1687_v0  ;;  %v1372_v2 = vcombine.high %v74_v1, %v74_v1  ;;  %v1371_v3 = vcombine.low %v74_v1, %v74_v1  ;;  %v1560_v5 = vld [vmem:[%s2123_s0] sm:$0xff]   ;;  %v1561_v7 = vld [vmem:[%s2123_s0 + $0x8] sm:$0xff]   ;;  %v1576_v9 = vld [vmem:[#allocation2 + $0x70] ss:$8 sps:$4 sm:$0xff]  }
  0x10   :  { %v1568_v6 = vld [vmem:[%s2123_s0 + $0x40] sm:$0xff]   ;;  %v1569_v8 = vld [vmem:[%s2123_s0 + $0x48] sm:$0xff]   ;;  %v1578_v10 = vld [vmem:[#allocation2 + $0x74] ss:$8 sps:$4 sm:$0xff]   ;;  %v1818_v54 = vshrl.u32 %v77_v53, 7 }
  0x11   :  { %1373 = vmatprep.subr.msk.bf16.mxu0 %vm221_vm0, %v1372_v2  ;;  %v223_v4 = vsel %vm221_vm0, %v1371_v3, 0  ;;  %1551 = vmatprep.subr.msk.bf16.mxu1 %vm221_vm0, %v1372_v2  ;;  %v1581_v11 = vld [vmem:[#allocation2 + $0x64] ss:$8 sps:$4 sm:$0xff]   ;;  %v1562_v12 = vld [vmem:[%s2123_s0 + $0x10] sm:$0xff]   ;;  %v1579_v13 = vld [vmem:[#allocation2 + $0x60] ss:$8 sps:$4 sm:$0xff]  }
  0x12   :  { %243 = vmatpush1.bf16.msra.mxu0 %v223_v4  ;;  %1552 = vmatpush1.bf16.msra.mxu1 %v223_v4  ;;  %v1584_v14 = vld [vmem:[#allocation2 + $0x54] ss:$8 sps:$4 sm:$0xff]   ;;  %v1582_v16 = vld [vmem:[#allocation2 + $0x50] ss:$8 sps:$4 sm:$0xff]   ;;  %v1587_v17 = vld [vmem:[#allocation2 + $0x44] ss:$8 sps:$4 sm:$0xff]  }
  0x13   :  { %721 = vmatprep.subr.bf16.mxu1 %v1578_v10  ;;  %v1570_v15 = vld [vmem:[%s2123_s0 + $0x50] sm:$0xff]   ;;  %v1563_v18 = vld [vmem:[%s2123_s0 + $0x18] sm:$0xff]   ;;  %v1585_v19 = vld [vmem:[#allocation2 + $0x40] ss:$8 sps:$4 sm:$0xff]   ;;  %v83_v55 = vsub.s32 1, %v1818_v54  ;;  %v79_v56 = vsub.s32 0, %v1818_v54 }
  0x14   :  { %v1590_v20 = vld [vmem:[#allocation2 + $0x34] ss:$8 sps:$4 sm:$0xff]   ;;  %v1588_v22 = vld [vmem:[#allocation2 + $0x30] ss:$8 sps:$4 sm:$0xff]   ;;  %v1564_v23 = vld [vmem:[%s2123_s0 + $0x20] sm:$0xff]  }
  0x15   :  { %1374 = vmatmul.mubr.msk.bf16.vlgmr.msra.gmra.mxu0 %vm172_vm1, %v1560_v5  ;;  %1382 = vmatmul.mubr.msk.bf16.vlgmr.msra.gmra.mxu1 %vm172_vm1, %v1568_v6  ;;  %v1571_v21 = vld [vmem:[%s2123_s0 + $0x58] sm:$0xff]   ;;  %v1593_v24 = vld [vmem:[#allocation2 + $0x24] ss:$8 sps:$4 sm:$0xff]   ;;  %v1591_v25 = vld [vmem:[#allocation2 + $0x20] ss:$8 sps:$4 sm:$0xff]  }
  0x16   :  { %270 = vmatprep.mubr.bf16.mxu0 %v1687_v0  ;;  %350 = vmatprep.mubr.bf16.mxu1 %v1687_v0  ;;  %v1596_v26 = vld [vmem:[#allocation2 + $0x14] ss:$8 sps:$4 sm:$0xff]   ;;  %v1572_v27 = vld [vmem:[%s2123_s0 + $0x60] sm:$0xff]   ;;  %v1594_v28 = vld [vmem:[#allocation2 + $0x10] ss:$8 sps:$4 sm:$0xff]  }
  0x17   :  { %722 = vmatpush1.bf16.msra.mxu1 %v1576_v9  ;;  %v1599_v29 = vld [vmem:[#allocation2 + $0x4] ss:$8 sps:$4 sm:$0xff]   ;;  %v1597_v31 = vld [vmem:[#allocation2] ss:$8 sps:$4 sm:$0xff]   ;;  %v1602_v32 = vld [vmem:[#allocation2 + $0xf4] ss:$8 sps:$4 sm:$0xff]  }
  0x18   :  { %723 = vmatprep.subr.bf16.mxu1 %v1581_v11  ;;  %v1565_v30 = vld [vmem:[%s2123_s0 + $0x28] sm:$0xff]   ;;  %v1600_v34 = vld [vmem:[#allocation2 + $0xf0] ss:$8 sps:$4 sm:$0xff]   ;;  %v1608_v38 = vld [vmem:[#allocation2 + $0xd4] ss:$8 sps:$4 sm:$0xff]  }
  0x19   :  { %v1573_v33 = vld [vmem:[%s2123_s0 + $0x68] sm:$0xff]   ;;  %v1566_v36 = vld [vmem:[%s2123_s0 + $0x30] sm:$0xff]   ;;  %v1567_v42 = vld [vmem:[%s2123_s0 + $0x38] sm:$0xff]  }
  0x1a   :  { %v1605_v35 = vld [vmem:[#allocation2 + $0xe4] ss:$8 sps:$4 sm:$0xff]   ;;  %v1603_v37 = vld [vmem:[#allocation2 + $0xe0] ss:$8 sps:$4 sm:$0xff]   ;;  %v1574_v39 = vld [vmem:[%s2123_s0 + $0x70] sm:$0xff]  }
  0x1b   :  { %724 = vmatpush1.bf16.msra.mxu1 %v1579_v13  ;;  %v1606_v40 = vld [vmem:[#allocation2 + $0xd0] ss:$8 sps:$4 sm:$0xff]   ;;  %v1611_v41 = vld [vmem:[#allocation2 + $0xc4] ss:$8 sps:$4 sm:$0xff]   ;;  %v1609_v43 = vld [vmem:[#allocation2 + $0xc0] ss:$8 sps:$4 sm:$0xff]  }
  0x1c   :  { %725 = vmatprep.subr.bf16.mxu1 %v1584_v14  ;;  %v1614_v44 = vld [vmem:[#allocation2 + $0xb4] ss:$8 sps:$4 sm:$0xff]   ;;  %v1612_v46 = vld [vmem:[#allocation2 + $0xb0] ss:$8 sps:$4 sm:$0xff]   ;;  %v1617_v47 = vld [vmem:[#allocation2 + $0xa4] ss:$8 sps:$4 sm:$0xff]  }
  0x1d   :  { %1375 = vmatmul.mubr.msk.bf16.gmra.mxu0 %vm172_vm1, %v1561_v7  ;;  %1383 = vmatmul.mubr.msk.bf16.gmra.mxu1 %vm172_vm1, %v1569_v8  ;;  %v1575_v45 = vld [vmem:[%s2123_s0 + $0x78] sm:$0xff]   ;;  %v1615_v48 = vld [vmem:[#allocation2 + $0xa0] ss:$8 sps:$4 sm:$0xff]   ;;  %v1623_v51 = vld [vmem:[#allocation2 + $0x84] ss:$8 sps:$4 sm:$0xff]  }
  0x1e   :  { %280 = vmatprep.mubr.bf16.mxu0 %v1687_v0  ;;  %360 = vmatprep.mubr.bf16.mxu1 %v1687_v0  ;;  %v1620_v49 = vld [vmem:[#allocation2 + $0x94] ss:$8 sps:$4 sm:$0xff]   ;;  %v1618_v50 = vld [vmem:[#allocation2 + $0x90] ss:$8 sps:$4 sm:$0xff]   ;;  %v1621_v52 = vld [vmem:[#allocation2 + $0x80] ss:$8 sps:$4 sm:$0xff]  }
  0x1f   :  { %726 = vmatpush1.bf16.msra.mxu1 %v1582_v16  ;;  %v75_v57 = vld [vmem:[%s2125_s2] sm:$0x3]  ;;  %v1624_v5 = vld [vmem:[%s2128_s5 + $0x78] sm:$0xff]   ;;  %v1626_v7 = vld [vmem:[%s2128_s5 + $0x70] sm:$0xff]  }
  0x20   :  { %727 = vmatprep.subr.bf16.mxu1 %v1587_v17  ;;  %v1827_v59 = vrot.slane %v75_v57, %v83_v55  ;;  %v1831_v60 = vrot.slane %v75_v57, %v79_v56  ;;  %v1625_v6 = vld [vmem:[%s2128_s5 + $0x38] sm:$0xff]   ;;  %1439 = vmatprep.subr.bf16.mxu0 %v1624_v5  ;;  %v1627_v14 = vld [vmem:[%s2128_s5 + $0x30] sm:$0xff]  }
  0x21   :  { %1440 = vmatpush3.bf16.msra.mxu0 %v1625_v6 }
  0x22   :  { %1441 = vmatprep.subr.bf16.mxu0 %v1626_v7 }
  0x23   :  { %728 = vmatpush1.bf16.msra.mxu1 %v1585_v19 }
  0x24   :  { %729 = vmatprep.subr.bf16.mxu1 %v1590_v20 }
  0x25   :  { %1376 = vmatmul.mubr.msk.bf16.gmra.mxu0 %vm172_vm1, %v1562_v12  ;;  %1384 = vmatmul.mubr.msk.bf16.gmra.mxu1 %vm172_vm1, %v1570_v15 }
  0x26   :  { %290 = vmatprep.mubr.bf16.mxu0 %v1687_v0  ;;  %370 = vmatprep.mubr.bf16.mxu1 %v1687_v0 }
  0x27   :  { %730 = vmatpush1.bf16.msra.mxu1 %v1588_v22  ;;  %1442 = vmatpush3.bf16.msra.mxu0 %v1627_v14 }
  0x28   :  { %731 = vmatprep.subr.bf16.mxu1 %v1593_v24 }
  0x2b   :  { %732 = vmatpush1.bf16.msra.mxu1 %v1591_v25  ;;  %v1629_v25 = vld [vmem:[%s2128_s5 + $0x28] sm:$0xff]  }
  0x2c   :  { %733 = vmatprep.subr.bf16.mxu1 %v1596_v26 }
  0x2d   :  { %1377 = vmatmul.mubr.msk.bf16.gmra.mxu0 %vm172_vm1, %v1563_v18  ;;  %1385 = vmatmul.mubr.msk.bf16.gmra.mxu1 %vm172_vm1, %v1571_v21  ;;  %v1628_v18 = vld [vmem:[%s2128_s5 + $0x68] sm:$0xff]  }
  0x2e   :  { %300 = vmatprep.mubr.bf16.mxu0 %v1687_v0  ;;  %380 = vmatprep.mubr.bf16.mxu1 %v1687_v0 }
  0x2f   :  { %734 = vmatpush1.bf16.msra.mxu1 %v1594_v28  ;;  %1443 = vmatprep.subr.bf16.mxu0 %v1628_v18 }
  0x30   :  { %735 = vmatprep.subr.bf16.mxu1 %v1599_v29  ;;  %v1630_v29 = vld [vmem:[%s2128_s5 + $0x60] sm:$0xff]   ;;  %1444 = vmatpush3.bf16.msra.mxu0 %v1629_v25 }
  0x31   :  { %1445 = vmatprep.subr.bf16.mxu0 %v1630_v29 }
  0x33   :  { %736 = vmatpush1.bf16.msra.mxu1 %v1597_v31 }
  0x34   :  { %737 = vmatprep.subr.bf16.mxu1 %v1602_v32 }
  0x35   :  { %1378 = vmatmul.mubr.msk.bf16.gmra.mxu0 %vm172_vm1, %v1564_v23  ;;  %1386 = vmatmul.mubr.msk.bf16.gmra.mxu1 %vm172_vm1, %v1572_v27 }
  0x36   :  { %310 = vmatprep.mubr.bf16.mxu0 %v1687_v0  ;;  %390 = vmatprep.mubr.bf16.mxu1 %v1687_v0 }
  0x37   :  { %738 = vmatpush2.bf16.msra.mxu1 %v1600_v34 }
  0x38   :  { %739 = vmatprep.subr.bf16.mxu1 %v1605_v35 }
  0x3b   :  { %740 = vmatpush2.bf16.msra.mxu1 %v1603_v37 }
  0x3c   :  { %741 = vmatprep.subr.bf16.mxu1 %v1608_v38 }
  0x3d   :  { %1379 = vmatmul.mubr.msk.bf16.gmra.mxu0 %vm172_vm1, %v1565_v30  ;;  %1387 = vmatmul.mubr.msk.bf16.gmra.mxu1 %vm172_vm1, %v1573_v33 }
  0x3e   :  { %320 = vmatprep.mubr.bf16.mxu0 %v1687_v0  ;;  %400 = vmatprep.mubr.bf16.mxu1 %v1687_v0 }
  0x3f   :  { %742 = vmatpush2.bf16.msra.mxu1 %v1606_v40  ;;  %v1632_v40 = vld [vmem:[%s2128_s5 + $0x58] sm:$0xff]  }
  0x40   :  { %743 = vmatprep.subr.bf16.mxu1 %v1611_v41 }
  0x43   :  { %744 = vmatpush2.bf16.msra.mxu1 %v1609_v43 }
  0x44   :  { %745 = vmatprep.subr.bf16.mxu1 %v1614_v44 }
  0x45   :  { %1380 = vmatmul.mubr.msk.bf16.gmra.mxu0 %vm172_vm1, %v1566_v36  ;;  %1388 = vmatmul.mubr.msk.bf16.gmra.mxu1 %vm172_vm1, %v1574_v39  ;;  %v1631_v36 = vld [vmem:[%s2128_s5 + $0x20] sm:$0xff]  }
  0x46   :  { %330 = vmatprep.mubr.bf16.mxu0 %v1687_v0  ;;  %410 = vmatprep.mubr.bf16.mxu1 %v1687_v0 }
  0x47   :  { %746 = vmatpush2.bf16.msra.mxu1 %v1612_v46  ;;  %1446 = vmatpush3.bf16.msra.mxu0 %v1631_v36 }
  0x48   :  { %747 = vmatprep.subr.bf16.mxu1 %v1617_v47  ;;  %v1633_v47 = vld [vmem:[%s2128_s5 + $0x18] sm:$0xff]   ;;  %1447 = vmatprep.subr.bf16.mxu0 %v1632_v40 }
  0x4b   :  { %748 = vmatpush2.bf16.msra.mxu1 %v1615_v48  ;;  %1448 = vmatpush3.bf16.msra.mxu0 %v1633_v47 }
  0x4c   :  { %749 = vmatprep.subr.bf16.mxu1 %v1620_v49 }
  0x4d   :  { %1381 = vmatmul.mubr.msk.bf16.gmra.mxu0 %vm172_vm1, %v1567_v42  ;;  %1389 = vmatmul.mubr.msk.bf16.gmra.mxu1 %vm172_vm1, %v1575_v45 }
  0x4f   :  { %750 = vmatpush2.bf16.msra.mxu1 %v1618_v50  ;;  %v1634_v50 = vld [vmem:[%s2128_s5 + $0x50] sm:$0xff]  }
  0x50   :  { %751 = vmatprep.subr.bf16.mxu1 %v1623_v51  ;;  %1449 = vmatprep.subr.bf16.mxu0 %v1634_v50 }
  0x53   :  { %752 = vmatpush2.bf16.msra.mxu1 %v1621_v52 }
  0xd5   :  { %v262_v58 = vpop.f32.mrf.mxu0  ;;  %v1833_v63 = vpop.f32.mrf.mxu1 }
  0xd6   :  { %v263_v2 = vadd.f32 %v262_v58, %v1831_v60 }
  0xd7   :  { %v264_v61 = vpop.f32.mrf.mxu0  ;;  %v1838_v4 = vpop.f32.mrf.mxu1 }
  0xd8   :  { %v265_v0 = vadd.f32 %v264_v61, %v1827_v59  ;;  %v421_v15 = vmax.f32 %v263_v2, 0.0  ;;  %v1636_v2 = vld [vmem:[%s2128_s5 + $0x48] sm:$0xff]  }
  0xd9   :  { %v266_v62 = vpop.f32.mrf.mxu0  ;;  %v1850_v11 = vpop.f32.mrf.mxu1 }
  0xda   :  { %v267_v1 = vadd.f32 %v266_v62, %v1831_v60  ;;  %v422_v12 = vmax.f32 %v265_v0, 0.0  ;;  %v1635_v62 = vld [vmem:[%s2128_s5 + $0x10] sm:$0xff]  }
  0xdb   :  { %v268_v3 = vpop.f32.mrf.mxu0  ;;  %v1855_v17 = vpop.f32.mrf.mxu1  ;;  %1450 = vmatpush3.bf16.msra.mxu0 %v1635_v62 }
  0xdc   :  { %v269_v8 = vadd.f32 %v268_v3, %v1827_v59  ;;  %v423_v9 = vmax.f32 %v267_v1, 0.0  ;;  %1451 = vmatprep.subr.bf16.mxu0 %v1636_v2 }
  0xdd   :  { %v272_v10 = vpop.f32.mrf.mxu0  ;;  %v1860_v22 = vpop.f32.mrf.mxu1 }
  0xde   :  { %v424_v13 = vmax.f32 %v269_v8, 0.0  ;;  %v485_v20 = vpack.c.bf16 %v423_v9, %v421_v15  ;;  %v273_v26 = vadd.f32 %v272_v10, %v1831_v60  ;;  %v1637_v10 = vld [vmem:[%s2128_s5 + $0x8] sm:$0xff]  }
  0xdf   :  { %v274_v16 = vpop.f32.mrf.mxu0  ;;  %v1868_v28 = vpop.f32.mrf.mxu1  ;;  %1452 = vmatpush3.bf16.msra.mxu0 %v1637_v10 }
  0xe0   :  { %v486_v19 = vpack.c.bf16 %v424_v13, %v422_v12  ;;  %v275_v23 = vadd.f32 %v274_v16, %v1827_v59  ;;  %v425_v37 = vmax.f32 %v273_v26, 0.0 }
  0xe1   :  { %v276_v21 = vpop.f32.mrf.mxu0  ;;  %v1874_v33 = vpop.f32.mrf.mxu1 }
  0xe2   :  { %v277_v24 = vadd.f32 %v276_v21, %v1831_v60  ;;  %753 = vmatprep.mubr.bf16.mxu1 %v486_v19  ;;  %v426_v34 = vmax.f32 %v275_v23, 0.0 }
  0xe3   :  { %v278_v27 = vpop.f32.mrf.mxu0  ;;  %754 = vmatmul.mubr.bf16.vlgmr.msra.gmra.mxu1 %v485_v20  ;;  %v1879_v39 = vpop.f32.mrf.mxu1 }
  0xe4   :  { %v279_v30 = vadd.f32 %v278_v27, %v1827_v59  ;;  %v427_v31 = vmax.f32 %v277_v24, 0.0 }
  0xe5   :  { %v282_v32 = vpop.f32.mrf.mxu0  ;;  %v1884_v44 = vpop.f32.mrf.mxu1 }
  0xe6   :  { %v428_v35 = vmax.f32 %v279_v30, 0.0  ;;  %v487_v42 = vpack.c.bf16 %v427_v31, %v425_v37  ;;  %v283_v48 = vadd.f32 %v282_v32, %v1831_v60 }
  0xe7   :  { %v284_v38 = vpop.f32.mrf.mxu0  ;;  %v1896_v57 = vpop.f32.mrf.mxu1 }
  0xe8   :  { %v488_v41 = vpack.c.bf16 %v428_v35, %v426_v34  ;;  %v285_v45 = vadd.f32 %v284_v38, %v1827_v59  ;;  %v429_v0 = vmax.f32 %v283_v48, 0.0 }
  0xe9   :  { %v286_v43 = vpop.f32.mrf.mxu0  ;;  %v1904_v7 = vpop.f32.mrf.mxu1 }
  0xea   :  { %v287_v46 = vadd.f32 %v286_v43, %v1831_v60  ;;  %763 = vmatprep.mubr.bf16.mxu1 %v488_v41  ;;  %v430_v58 = vmax.f32 %v285_v45, 0.0 }
  0xeb   :  { %v288_v49 = vpop.f32.mrf.mxu0  ;;  %764 = vmatmul.mubr.bf16.gmra.mxu1 %v487_v42  ;;  %v1913_v18 = vpop.f32.mrf.mxu1 }
  0xec   :  { %v289_v51 = vadd.f32 %v288_v49, %v1827_v59  ;;  %v431_v52 = vmax.f32 %v287_v46, 0.0 }
  0xed   :  { %v292_v53 = vpop.f32.mrf.mxu0  ;;  %v1915_v27 = vpop.f32.mrf.mxu1 }
  0xee   :  { %v432_v61 = vmax.f32 %v289_v51, 0.0  ;;  %v489_v5 = vpack.c.bf16 %v431_v52, %v429_v0  ;;  %v293_v12 = vadd.f32 %v292_v53, %v1831_v60 }
  0xef   :  { %v294_v1 = vpop.f32.mrf.mxu0  ;;  %v1921_v37 = vpop.f32.mrf.mxu1 }
  0xf0   :  { %v490_v3 = vpack.c.bf16 %v432_v61, %v430_v58  ;;  %v295_v8 = vadd.f32 %v294_v1, %v1827_v59  ;;  %v433_v21 = vmax.f32 %v293_v12, 0.0 }
  0xf1   :  { %v296_v6 = vpop.f32.mrf.mxu0  ;;  %v1923_v47 = vpop.f32.mrf.mxu1 }
  0xf2   :  { %v297_v9 = vadd.f32 %v296_v6, %v1831_v60  ;;  %773 = vmatprep.mubr.bf16.mxu1 %v490_v3  ;;  %v434_v19 = vmax.f32 %v295_v8, 0.0 }
  0xf3   :  { %v298_v13 = vpop.f32.mrf.mxu0  ;;  %774 = vmatmul.mubr.bf16.gmra.mxu1 %v489_v5  ;;  %v1929_v61 = vpop.f32.mrf.mxu1 }
  0xf4   :  { %v299_v14 = vadd.f32 %v298_v13, %v1827_v59  ;;  %v435_v15 = vmax.f32 %v297_v9, 0.0 }
  0xf5   :  { %v302_v16 = vpop.f32.mrf.mxu0  ;;  %v1931_v8 = vpop.f32.mrf.mxu1 }
  0xf6   :  { %v436_v20 = vmax.f32 %v299_v14, 0.0  ;;  %v491_v25 = vpack.c.bf16 %v435_v15, %v433_v21  ;;  %v303_v31 = vadd.f32 %v302_v16, %v1831_v60 }
  0xf7   :  { %v304_v23 = vpop.f32.mrf.mxu0 }
  0xf8   :  { %v492_v24 = vpack.c.bf16 %v436_v20, %v434_v19  ;;  %v305_v29 = vadd.f32 %v304_v23, %v1827_v59  ;;  %v437_v41 = vmax.f32 %v303_v31, 0.0  ;;  %v1937_v19 = vpop.f32.mrf.mxu1 }
  0xf9   :  { %v306_v26 = vpop.f32.mrf.mxu0 }
  0xfa   :  { %v307_v30 = vadd.f32 %v306_v26, %v1831_v60  ;;  %783 = vmatprep.mubr.bf16.mxu1 %v492_v24  ;;  %v438_v38 = vmax.f32 %v305_v29, 0.0  ;;  %v345_v26 = vadd.f32 %v1838_v4, %v1827_v59  ;;  %v349_v29 = vadd.f32 %v1855_v17, %v1827_v59 }
  0xfb   :  { %v308_v32 = vpop.f32.mrf.mxu0  ;;  %784 = vmatmul.mubr.bf16.gmra.mxu1 %v491_v25 }
  0xfc   :  { %v309_v34 = vadd.f32 %v308_v32, %v1827_v59  ;;  %v439_v35 = vmax.f32 %v307_v30, 0.0  ;;  %v1943_v32 = vpop.f32.mrf.mxu1  ;;  %v456_v4 = vmax.f32 %v349_v29, 0.0 }
  0xfd   :  { %v312_v36 = vpop.f32.mrf.mxu0 }
  0xfe   :  { %v440_v40 = vmax.f32 %v309_v34, 0.0  ;;  %v493_v45 = vpack.c.bf16 %v439_v35, %v437_v41  ;;  %v313_v50 = vadd.f32 %v312_v36, %v1831_v60 }
  0xff   :  { %v314_v42 = vpop.f32.mrf.mxu0 }
 0x100   :  { %v494_v43 = vpack.c.bf16 %v440_v40, %v438_v38  ;;  %v315_v48 = vadd.f32 %v314_v42, %v1827_v59  ;;  %v441_v1 = vmax.f32 %v313_v50, 0.0  ;;  %v454_v40 = vmax.f32 %v345_v26, 0.0 }
 0x101   :  { %v316_v46 = vpop.f32.mrf.mxu0  ;;  %v355_v50 = vadd.f32 %v1868_v28, %v1827_v59 }
 0x102   :  { %v317_v49 = vadd.f32 %v316_v46, %v1831_v60  ;;  %793 = vmatprep.mubr.bf16.mxu1 %v494_v43  ;;  %v442_v62 = vmax.f32 %v315_v48, 0.0  ;;  %v388_v43 = vpop.f32.mrf.mxu1 }
 0x103   :  { %v318_v51 = vpop.f32.mrf.mxu0  ;;  %794 = vmatmul.mubr.bf16.gmra.mxu1 %v493_v45 }
 0x104   :  { %v319_v52 = vadd.f32 %v318_v51, %v1827_v59  ;;  %v443_v53 = vmax.f32 %v317_v49, 0.0  ;;  %v502_v49 = vpack.c.bf16 %v456_v4, %v454_v40  ;;  %v359_v51 = vadd.f32 %v1879_v39, %v1827_v59 }
 0x105   :  { %v322_v58 = vpop.f32.mrf.mxu0  ;;  %v365_v39 = vadd.f32 %v1896_v57, %v1827_v59  ;;  %v375_v57 = vadd.f32 %v1921_v37, %v1827_v59  ;;  %v1639_v37 = vld [vmem:[%s2128_s5] sm:$0xff]  }
 0x106   :  { %v444_v0 = vmax.f32 %v319_v52, 0.0  ;;  %v495_v5 = vpack.c.bf16 %v443_v53, %v441_v1  ;;  %v323_v12 = vadd.f32 %v322_v58, %v1831_v60  ;;  %v343_v52 = vadd.f32 %v1833_v63, %v1831_v60 }
 0x107   :  { %v324_v2 = vpop.f32.mrf.mxu0  ;;  %v347_v58 = vadd.f32 %v1850_v11, %v1831_v60  ;;  %v460_v1 = vmax.f32 %v359_v51, 0.0  ;;  %v369_v63 = vadd.f32 %v1913_v18, %v1827_v59  ;;  %v353_v11 = vadd.f32 %v1860_v22, %v1831_v60 }
 0x108   :  { %v496_v3 = vpack.c.bf16 %v444_v0, %v442_v62  ;;  %v325_v9 = vadd.f32 %v324_v2, %v1827_v59  ;;  %v445_v23 = vmax.f32 %v323_v12, 0.0  ;;  %v1957_v62 = vpop.f32.mrf.mxu1  ;;  %v458_v0 = vmax.f32 %v355_v50, 0.0 }
 0x109   :  { %v326_v6 = vpop.f32.mrf.mxu0  ;;  %v453_v2 = vmax.f32 %v343_v52, 0.0  ;;  %v462_v12 = vmax.f32 %v365_v39, 0.0  ;;  %v379_v18 = vadd.f32 %v1929_v61, %v1827_v59  ;;  %v363_v22 = vadd.f32 %v1884_v44, %v1831_v60 }
 0x10a   :  { %v327_v10 = vadd.f32 %v326_v6, %v1831_v60  ;;  %803 = vmatprep.mubr.bf16.mxu1 %v496_v3  ;;  %v446_v20 = vmax.f32 %v325_v9, 0.0  ;;  %v455_v3 = vmax.f32 %v347_v58, 0.0  ;;  %v394_v28 = vpop.f32.mrf.mxu1  ;;  %v357_v9 = vadd.f32 %v1874_v33, %v1831_v60 }
 0x10b   :  { %v328_v13 = vpop.f32.mrf.mxu0  ;;  %804 = vmatmul.mubr.bf16.gmra.mxu1 %v495_v5  ;;  %v504_v5 = vpack.c.bf16 %v460_v1, %v458_v0  ;;  %v367_v33 = vadd.f32 %v1904_v7, %v1831_v60  ;;  %v468_v26 = vmax.f32 %v379_v18, 0.0  ;;  %v461_v61 = vmax.f32 %v363_v22, 0.0 }
 0x10c   :  { %v329_v14 = vadd.f32 %v328_v13, %v1827_v59  ;;  %v447_v15 = vmax.f32 %v327_v10, 0.0  ;;  %v501_v6 = vpack.c.bf16 %v455_v3, %v453_v2  ;;  %v396_v10 = vpop.f32.mrf.mxu1  ;;  %v464_v13 = vmax.f32 %v369_v63, 0.0 }
 0x10d   :  { %v332_v16 = vpop.f32.mrf.mxu0  ;;  %v463_v29 = vmax.f32 %v367_v33, 0.0  ;;  %v385_v7 = vadd.f32 %v1937_v19, %v1827_v59  ;;  %v395_v19 = vadd.f32 %v394_v28, %v1827_v59  ;;  %v397_v3 = vadd.f32 %v396_v10, %v1831_v60 }
 0x10e   :  { %v448_v21 = vmax.f32 %v329_v14, 0.0  ;;  %v497_v30 = vpack.c.bf16 %v447_v15, %v445_v23  ;;  %v333_v36 = vadd.f32 %v332_v16, %v1831_v60  ;;  %v457_v14 = vmax.f32 %v353_v11, 0.0  ;;  %v398_v16 = vpop.f32.mrf.mxu1 }
 0x10f   :  { %v334_v24 = vpop.f32.mrf.mxu0  ;;  %v459_v15 = vmax.f32 %v357_v9, 0.0  ;;  %v470_v40 = vmax.f32 %v385_v7, 0.0  ;;  %v475_v63 = vmax.f32 %v397_v3, 0.0 }
 0x110   :  { %v498_v25 = vpack.c.bf16 %v448_v21, %v446_v20  ;;  %v335_v34 = vadd.f32 %v334_v24, %v1827_v59  ;;  %v449_v46 = vmax.f32 %v333_v36, 0.0  ;;  %v506_v20 = vpack.c.bf16 %v464_v13, %v462_v12  ;;  %v402_v23 = vpop.f32.mrf.mxu1  ;;  %v1638_v24 = vld [vmem:[%s2128_s5 + $0x40] sm:$0xff]  }
 0x111   :  { %v336_v31 = vpop.f32.mrf.mxu0  ;;  %v503_v21 = vpack.c.bf16 %v459_v15, %v457_v14  ;;  %1453 = vmatprep.subr.bf16.mxu0 %v1638_v24  ;;  %v377_v36 = vadd.f32 %v1923_v47, %v1831_v60  ;;  %v387_v47 = vadd.f32 %v1943_v32, %v1831_v60  ;;  %v403_v14 = vadd.f32 %v402_v23, %v1831_v60  ;;  %v549_v23 = vld [vmem:[%s2127_s4] sm:$0x3] }
 0x112   :  { %v337_v35 = vadd.f32 %v336_v31, %v1831_v60  ;;  %813 = vmatprep.mubr.bf16.mxu1 %v498_v25  ;;  %v450_v17 = vmax.f32 %v335_v34, 0.0  ;;  %v466_v25 = vmax.f32 %v375_v57, 0.0  ;;  %1454 = vmatpush3.bf16.msra.mxu0 %v1639_v37  ;;  %v389_v31 = vadd.f32 %v388_v43, %v1827_v59 }
 0x113   :  { %v338_v38 = vpop.f32.mrf.mxu0  ;;  %814 = vmatmul.mubr.bf16.gmra.mxu1 %v497_v30  ;;  %v404_v30 = vpop.f32.mrf.mxu1  ;;  %v505_v34 = vpack.c.bf16 %v463_v29, %v461_v61  ;;  %v399_v43 = vadd.f32 %v398_v16, %v1827_v59  ;;  %v471_v52 = vmax.f32 %v387_v47, 0.0  ;;  %v477_v16 = vmax.f32 %v403_v14, 0.0 }
 0x114   :  { %v339_v41 = vadd.f32 %v338_v38, %v1827_v59  ;;  %v451_v42 = vmax.f32 %v337_v35, 0.0  ;;  %v508_v44 = vpack.c.bf16 %v468_v26, %v466_v25  ;;  %v373_v35 = vadd.f32 %v1915_v27, %v1831_v60 }
 0x115   :  { %v406_v38 = vpop.f32.mrf.mxu1  ;;  %v383_v27 = vadd.f32 %v1931_v8, %v1831_v60  ;;  %v476_v50 = vmax.f32 %v399_v43, 0.0  ;;  %v405_v0 = vadd.f32 %v404_v30, %v1827_v59  ;;  %v393_v8 = vadd.f32 %v1957_v62, %v1831_v60 }
 0x116   :  { %v452_v45 = vmax.f32 %v339_v41, 0.0  ;;  %v499_v53 = vpack.c.bf16 %v451_v42, %v449_v46  ;;  %v472_v41 = vmax.f32 %v389_v31, 0.0  ;;  %v465_v4 = vmax.f32 %v373_v35, 0.0 }
 0x117   :  { %v467_v42 = vmax.f32 %v377_v36, 0.0  ;;  %v469_v51 = vmax.f32 %v383_v27, 0.0  ;;  %v478_v28 = vmax.f32 %v405_v0, 0.0  ;;  %v473_v39 = vmax.f32 %v393_v8, 0.0 }
 0x118   :  { %v500_v48 = vpack.c.bf16 %v452_v45, %v450_v17  ;;  %v408_v17 = vpop.f32.mrf.mxu1  ;;  %v510_v45 = vpack.c.bf16 %v472_v41, %v470_v40  ;;  %v407_v62 = vadd.f32 %v406_v38, %v1831_v60  ;;  %v2010_v26 = vrot.slane %v549_v23, %v83_v55 }
 0x119   :  { %v507_v46 = vpack.c.bf16 %v467_v42, %v465_v4  ;;  %v409_v1 = vadd.f32 %v408_v17, %v1827_v59  ;;  %v509_v2 = vpack.c.bf16 %v471_v52, %v469_v51  ;;  %v511_v13 = vpack.c.bf16 %v475_v63, %v473_v39 }
 0x11a   :  { %823 = vmatprep.mubr.bf16.mxu1 %v500_v48  ;;  %v412_v48 = vpop.f32.mrf.mxu1  ;;  %v2014_v37 = vrot.slane %v549_v23, %v79_v56 }
 0x11b   :  { %824 = vmatmul.mubr.bf16.gmra.mxu1 %v499_v53 }
 0x11c   :  { %833 = vmatprep.mubr.bf16.mxu1 %v502_v49  ;;  %v474_v49 = vmax.f32 %v395_v19, 0.0  ;;  %v414_v53 = vpop.f32.mrf.mxu1 }
 0x11d   :  { %v415_v9 = vadd.f32 %v414_v53, %v1827_v59 }
 0x11e   :  { %v512_v58 = vpack.c.bf16 %v476_v50, %v474_v49  ;;  %v416_v32 = vpop.f32.mrf.mxu1 }
 0x11f   :  { %v482_v10 = vmax.f32 %v415_v9, 0.0  ;;  %v417_v22 = vadd.f32 %v416_v32, %v1831_v60 }
 0x121   :  { %v483_v33 = vmax.f32 %v417_v22, 0.0 }
 0x123   :  { %834 = vmatmul.mubr.bf16.gmra.mxu1 %v501_v6  ;;  %v418_v6 = vpop.f32.mrf.mxu1 }
 0x124   :  { %843 = vmatprep.mubr.bf16.mxu1 %v504_v5  ;;  %v480_v5 = vmax.f32 %v409_v1, 0.0  ;;  %v419_v12 = vadd.f32 %v418_v6, %v1827_v59 }
 0x126   :  { %v514_v11 = vpack.c.bf16 %v480_v5, %v478_v28  ;;  %v484_v15 = vmax.f32 %v419_v12, 0.0 }
 0x128   :  { %v516_v57 = vpack.c.bf16 %v484_v15, %v482_v10 }
 0x12b   :  { %844 = vmatmul.mubr.bf16.gmra.mxu1 %v503_v21  ;;  %v413_v21 = vadd.f32 %v412_v48, %v1831_v60 }
 0x12c   :  { %853 = vmatprep.mubr.bf16.mxu1 %v506_v20  ;;  %v479_v20 = vmax.f32 %v407_v62, 0.0 }
 0x12d   :  { %v481_v59 = vmax.f32 %v413_v21, 0.0 }
 0x12e   :  { %v513_v18 = vpack.c.bf16 %v479_v20, %v477_v16 }
 0x12f   :  { %v515_v24 = vpack.c.bf16 %v483_v33, %v481_v59 }
 0x133   :  { %854 = vmatmul.mubr.bf16.gmra.mxu1 %v505_v34 }
 0x134   :  { %863 = vmatprep.mubr.bf16.mxu1 %v508_v44 }
 0x13b   :  { %864 = vmatmul.mubr.bf16.gmra.mxu1 %v507_v46 }
 0x13c   :  { %873 = vmatprep.mubr.bf16.mxu1 %v510_v45 }
 0x143   :  { %874 = vmatmul.mubr.bf16.gmra.mxu1 %v509_v2 }
 0x144   :  { %883 = vmatprep.mubr.bf16.mxu1 %v512_v58 }
 0x14b   :  { %884 = vmatmul.mubr.bf16.gmra.mxu1 %v511_v13 }
 0x14c   :  { %893 = vmatprep.mubr.bf16.mxu1 %v514_v11 }
 0x153   :  { %894 = vmatmul.mubr.bf16.gmra.mxu1 %v513_v18 }
 0x154   :  { %903 = vmatprep.mubr.bf16.mxu1 %v516_v57 }
 0x15b   :  { %904 = vmatmul.mubr.bf16.gmra.mxu1 %v515_v24 }
 0x1a3   :  { %v755_v25 = vpop.f32.mrf.mxu1 }
 0x1a4   :  { %v756_v44 = vadd.f32 %v755_v25, %v2014_v37 }
 0x1a5   :  { %v757_v60 = vpop.f32.mrf.mxu1 }
 0x1a6   :  { %v758_v29 = vadd.f32 %v757_v60, %v2010_v26  ;;  %v914_v38 = vmax.f32 %v756_v44, 0.0 }
 0x1a7   :  { %v759_v61 = vpop.f32.mrf.mxu1 }
 0x1a8   :  { %v760_v30 = vadd.f32 %v759_v61, %v2014_v37  ;;  %v915_v36 = vmax.f32 %v758_v29, 0.0 }
 0x1a9   :  { %v761_v7 = vpop.f32.mrf.mxu1 }
 0x1aa   :  { %v762_v31 = vadd.f32 %v761_v7, %v2010_v26  ;;  %v916_v34 = vmax.f32 %v760_v30, 0.0 }
 0x1ab   :  { %v765_v35 = vpop.f32.mrf.mxu1 }
 0x1ac   :  { %v917_v55 = vmax.f32 %v762_v31, 0.0  ;;  %v978_v56 = vpack.c.bf16 %v916_v34, %v914_v38  ;;  %v766_v17 = vadd.f32 %v765_v35, %v2014_v37 }
 0x1ad   :  { %v767_v40 = vpop.f32.mrf.mxu1 }
 0x1ae   :  { %v979_v54 = vpack.c.bf16 %v917_v55, %v915_v36  ;;  %v768_v4 = vadd.f32 %v767_v40, %v2010_v26  ;;  %v918_v48 = vmax.f32 %v766_v17, 0.0 }
 0x1af   :  { %v769_v41 = vpop.f32.mrf.mxu1 }
 0x1b0   :  { %v770_v42 = vadd.f32 %v769_v41, %v2014_v37  ;;  %1177 = vmatprep.mubr.bf16.mxu0 %v979_v54  ;;  %v919_v27 = vmax.f32 %v768_v4, 0.0 }
 0x1b1   :  { %v771_v45 = vpop.f32.mrf.mxu1  ;;  %1178 = vmatmul.mubr.bf16.vlgmr.msra.gmra.mxu0 %v978_v56 }
 0x1b2   :  { %v772_v19 = vadd.f32 %v771_v45, %v2010_v26  ;;  %v920_v43 = vmax.f32 %v770_v42, 0.0 }
 0x1b3   :  { %v775_v46 = vpop.f32.mrf.mxu1 }
 0x1b4   :  { %v921_v47 = vmax.f32 %v772_v19, 0.0  ;;  %v980_v51 = vpack.c.bf16 %v920_v43, %v918_v48  ;;  %v776_v0 = vadd.f32 %v775_v46, %v2014_v37 }
 0x1b5   :  { %v777_v49 = vpop.f32.mrf.mxu1 }
 0x1b6   :  { %v981_v50 = vpack.c.bf16 %v921_v47, %v919_v27  ;;  %v778_v53 = vadd.f32 %v777_v49, %v2010_v26  ;;  %v922_v5 = vmax.f32 %v776_v0, 0.0 }
 0x1b7   :  { %v779_v52 = vpop.f32.mrf.mxu1 }
 0x1b8   :  { %v780_v58 = vadd.f32 %v779_v52, %v2014_v37  ;;  %1185 = vmatprep.mubr.bf16.mxu0 %v981_v50  ;;  %v923_v32 = vmax.f32 %v778_v53, 0.0 }
 0x1b9   :  { %v781_v1 = vpop.f32.mrf.mxu1  ;;  %1186 = vmatmul.mubr.bf16.gmra.mxu0 %v980_v51 }
 0x1ba   :  { %v782_v2 = vadd.f32 %v781_v1, %v2010_v26  ;;  %v924_v8 = vmax.f32 %v780_v58, 0.0 }
 0x1bb   :  { %v785_v3 = vpop.f32.mrf.mxu1 }
 0x1bc   :  { %v925_v28 = vmax.f32 %v782_v2, 0.0  ;;  %v982_v6 = vpack.c.bf16 %v924_v8, %v922_v5  ;;  %v786_v13 = vadd.f32 %v785_v3, %v2014_v37 }
 0x1bd   :  { %v787_v39 = vpop.f32.mrf.mxu1 }
 0x1be   :  { %v983_v63 = vpack.c.bf16 %v925_v28, %v923_v32  ;;  %v788_v9 = vadd.f32 %v787_v39, %v2010_v26  ;;  %v926_v57 = vmax.f32 %v786_v13, 0.0 }
 0x1bf   :  { %v789_v11 = vpop.f32.mrf.mxu1 }
 0x1c0   :  { %v790_v12 = vadd.f32 %v789_v11, %v2014_v37  ;;  %1193 = vmatprep.mubr.bf16.mxu0 %v983_v63  ;;  %v927_v16 = vmax.f32 %v788_v9, 0.0 }
 0x1c1   :  { %v791_v14 = vpop.f32.mrf.mxu1  ;;  %1194 = vmatmul.mubr.bf16.gmra.mxu0 %v982_v6 }
 0x1c2   :  { %v792_v62 = vadd.f32 %v791_v14, %v2010_v26  ;;  %v928_v10 = vmax.f32 %v790_v12, 0.0 }
 0x1c3   :  { %v795_v15 = vpop.f32.mrf.mxu1 }
 0x1c4   :  { %v929_v20 = vmax.f32 %v792_v62, 0.0  ;;  %v984_v22 = vpack.c.bf16 %v928_v10, %v926_v57  ;;  %v796_v23 = vadd.f32 %v795_v15, %v2014_v37 }
 0x1c5   :  { %v797_v18 = vpop.f32.mrf.mxu1 }
 0x1c6   :  { %v985_v21 = vpack.c.bf16 %v929_v20, %v927_v16  ;;  %v798_v33 = vadd.f32 %v797_v18, %v2010_v26  ;;  %v930_v7 = vmax.f32 %v796_v23, 0.0 }
 0x1c7   :  { %v799_v59 = vpop.f32.mrf.mxu1 }
 0x1c8   :  { %v800_v24 = vadd.f32 %v799_v59, %v2014_v37  ;;  %1201 = vmatprep.mubr.bf16.mxu0 %v985_v21  ;;  %v931_v30 = vmax.f32 %v798_v33, 0.0 }
 0x1c9   :  { %v801_v25 = vpop.f32.mrf.mxu1  ;;  %1202 = vmatmul.mubr.bf16.gmra.mxu0 %v984_v22 }
 0x1ca   :  { %v802_v60 = vadd.f32 %v801_v25, %v2010_v26  ;;  %v932_v61 = vmax.f32 %v800_v24, 0.0 }
 0x1cb   :  { %v805_v29 = vpop.f32.mrf.mxu1 }
 0x1cc   :  { %v933_v44 = vmax.f32 %v802_v60, 0.0  ;;  %v986_v35 = vpack.c.bf16 %v932_v61, %v930_v7  ;;  %v806_v40 = vadd.f32 %v805_v29, %v2014_v37 }
 0x1cd   :  { %v807_v31 = vpop.f32.mrf.mxu1 }
 0x1ce   :  { %v987_v34 = vpack.c.bf16 %v933_v44, %v931_v30  ;;  %v808_v55 = vadd.f32 %v807_v31, %v2010_v26  ;;  %v934_v45 = vmax.f32 %v806_v40, 0.0 }
 0x1cf   :  { %v809_v36 = vpop.f32.mrf.mxu1 }
 0x1d0   :  { %v810_v38 = vadd.f32 %v809_v36, %v2014_v37  ;;  %1209 = vmatprep.mubr.bf16.mxu0 %v987_v34  ;;  %v935_v42 = vmax.f32 %v808_v55, 0.0 }
 0x1d1   :  { %v811_v54 = vpop.f32.mrf.mxu1  ;;  %1210 = vmatmul.mubr.bf16.gmra.mxu0 %v986_v35 }
 0x1d2   :  { %v812_v56 = vadd.f32 %v811_v54, %v2010_v26  ;;  %v936_v41 = vmax.f32 %v810_v38, 0.0 }
 0x1d3   :  { %v815_v4 = vpop.f32.mrf.mxu1 }
 0x1d4   :  { %v937_v17 = vmax.f32 %v812_v56, 0.0  ;;  %v988_v46 = vpack.c.bf16 %v936_v41, %v934_v45  ;;  %v816_v49 = vadd.f32 %v815_v4, %v2014_v37 }
 0x1d5   :  { %v817_v19 = vpop.f32.mrf.mxu1 }
 0x1d6   :  { %v989_v43 = vpack.c.bf16 %v937_v17, %v935_v42  ;;  %v818_v47 = vadd.f32 %v817_v19, %v2010_v26  ;;  %v938_v1 = vmax.f32 %v816_v49, 0.0 }
 0x1d7   :  { %v819_v27 = vpop.f32.mrf.mxu1 }
 0x1d8   :  { %v820_v48 = vadd.f32 %v819_v27, %v2014_v37  ;;  %1217 = vmatprep.mubr.bf16.mxu0 %v989_v43  ;;  %v939_v58 = vmax.f32 %v818_v47, 0.0 }
 0x1d9   :  { %v821_v50 = vpop.f32.mrf.mxu1  ;;  %1218 = vmatmul.mubr.bf16.gmra.mxu0 %v988_v46 }
 0x1da   :  { %v822_v51 = vadd.f32 %v821_v50, %v2010_v26  ;;  %v940_v52 = vmax.f32 %v820_v48, 0.0 }
 0x1db   :  { %v825_v53 = vpop.f32.mrf.mxu1 }
 0x1dc   :  { %v941_v0 = vmax.f32 %v822_v51, 0.0  ;;  %v990_v3 = vpack.c.bf16 %v940_v52, %v938_v1  ;;  %v826_v39 = vadd.f32 %v825_v53, %v2014_v37 }
 0x1dd   :  { %v827_v2 = vpop.f32.mrf.mxu1 }
 0x1de   :  { %v991_v8 = vpack.c.bf16 %v941_v0, %v939_v58  ;;  %v828_v28 = vadd.f32 %v827_v2, %v2010_v26  ;;  %v942_v14 = vmax.f32 %v826_v39, 0.0 }
 0x1df   :  { %v829_v32 = vpop.f32.mrf.mxu1 }
 0x1e0   :  { %v830_v5 = vadd.f32 %v829_v32, %v2014_v37  ;;  %1225 = vmatprep.mubr.bf16.mxu0 %v991_v8  ;;  %v943_v12 = vmax.f32 %v828_v28, 0.0 }
 0x1e1   :  { %v831_v63 = vpop.f32.mrf.mxu1  ;;  %1226 = vmatmul.mubr.bf16.gmra.mxu0 %v990_v3 }
 0x1e2   :  { %v832_v6 = vadd.f32 %v831_v63, %v2010_v26  ;;  %v944_v11 = vmax.f32 %v830_v5, 0.0 }
 0x1e3   :  { %v835_v9 = vpop.f32.mrf.mxu1 }
 0x1e4   :  { %v945_v13 = vmax.f32 %v832_v6, 0.0  ;;  %v992_v15 = vpack.c.bf16 %v944_v11, %v942_v14  ;;  %v836_v18 = vadd.f32 %v835_v9, %v2014_v37 }
 0x1e5   :  { %v837_v62 = vpop.f32.mrf.mxu1 }
 0x1e6   :  { %v993_v10 = vpack.c.bf16 %v945_v13, %v943_v12  ;;  %v838_v20 = vadd.f32 %v837_v62, %v2010_v26  ;;  %v946_v25 = vmax.f32 %v836_v18, 0.0 }
 0x1e7   :  { %v839_v16 = vpop.f32.mrf.mxu1 }
 0x1e8   :  { %v840_v57 = vadd.f32 %v839_v16, %v2014_v37  ;;  %1233 = vmatprep.mubr.bf16.mxu0 %v993_v10  ;;  %v947_v24 = vmax.f32 %v838_v20, 0.0 }
 0x1e9   :  { %v841_v21 = vpop.f32.mrf.mxu1  ;;  %1234 = vmatmul.mubr.bf16.gmra.mxu0 %v992_v15 }
 0x1ea   :  { %v842_v22 = vadd.f32 %v841_v21, %v2010_v26  ;;  %v948_v59 = vmax.f32 %v840_v57, 0.0 }
 0x1eb   :  { %v845_v33 = vpop.f32.mrf.mxu1 }
 0x1ec   :  { %v949_v23 = vmax.f32 %v842_v22, 0.0  ;;  %v994_v29 = vpack.c.bf16 %v948_v59, %v946_v25  ;;  %v846_v31 = vadd.f32 %v845_v33, %v2014_v37 }
 0x1ed   :  { %v847_v60 = vpop.f32.mrf.mxu1 }
 0x1ee   :  { %v995_v61 = vpack.c.bf16 %v949_v23, %v947_v24  ;;  %v848_v44 = vadd.f32 %v847_v60, %v2010_v26  ;;  %v950_v54 = vmax.f32 %v846_v31, 0.0 }
 0x1ef   :  { %v849_v30 = vpop.f32.mrf.mxu1 }
 0x1f0   :  { %v850_v7 = vadd.f32 %v849_v30, %v2014_v37  ;;  %1241 = vmatprep.mubr.bf16.mxu0 %v995_v61  ;;  %v951_v38 = vmax.f32 %v848_v44, 0.0 }
 0x1f1   :  { %v851_v34 = vpop.f32.mrf.mxu1  ;;  %1242 = vmatmul.mubr.bf16.gmra.mxu0 %v994_v29 }
 0x1f2   :  { %v852_v35 = vadd.f32 %v851_v34, %v2010_v26  ;;  %v952_v36 = vmax.f32 %v850_v7, 0.0 }
 0x1f3   :  { %v855_v55 = vpop.f32.mrf.mxu1 }
 0x1f4   :  { %v953_v40 = vmax.f32 %v852_v35, 0.0  ;;  %v996_v4 = vpack.c.bf16 %v952_v36, %v950_v54  ;;  %v856_v19 = vadd.f32 %v855_v55, %v2014_v37 }
 0x1f5   :  { %v857_v56 = vpop.f32.mrf.mxu1 }
 0x1f6   :  { %v997_v41 = vpack.c.bf16 %v953_v40, %v951_v38  ;;  %v858_v17 = vadd.f32 %v857_v56, %v2010_v26  ;;  %v954_v50 = vmax.f32 %v856_v19, 0.0 }
 0x1f7   :  { %v859_v42 = vpop.f32.mrf.mxu1 }
 0x1f8   :  { %v860_v45 = vadd.f32 %v859_v42, %v2014_v37  ;;  %1249 = vmatprep.mubr.bf16.mxu0 %v997_v41  ;;  %v955_v48 = vmax.f32 %v858_v17, 0.0 }
 0x1f9   :  { %v861_v43 = vpop.f32.mrf.mxu1  ;;  %1250 = vmatmul.mubr.bf16.gmra.mxu0 %v996_v4 }
 0x1fa   :  { %v862_v46 = vadd.f32 %v861_v43, %v2010_v26  ;;  %v956_v27 = vmax.f32 %v860_v45, 0.0 }
 0x1fb   :  { %v865_v47 = vpop.f32.mrf.mxu1 }
 0x1fc   :  { %v957_v49 = vmax.f32 %v862_v46, 0.0  ;;  %v998_v53 = vpack.c.bf16 %v956_v27, %v954_v50  ;;  %v866_v2 = vadd.f32 %v865_v47, %v2014_v37 }
 0x1fd   :  { %v867_v51 = vpop.f32.mrf.mxu1 }
 0x1fe   :  { %v999_v52 = vpack.c.bf16 %v957_v49, %v955_v48  ;;  %v868_v0 = vadd.f32 %v867_v51, %v2010_v26  ;;  %v958_v63 = vmax.f32 %v866_v2, 0.0 }
 0x1ff   :  { %v869_v58 = vpop.f32.mrf.mxu1 }
 0x200   :  { %v870_v1 = vadd.f32 %v869_v58, %v2014_v37  ;;  %1257 = vmatprep.mubr.bf16.mxu0 %v999_v52  ;;  %v959_v5 = vmax.f32 %v868_v0, 0.0 }
 0x201   :  { %v871_v8 = vpop.f32.mrf.mxu1  ;;  %1258 = vmatmul.mubr.bf16.gmra.mxu0 %v998_v53 }
 0x202   :  { %v872_v3 = vadd.f32 %v871_v8, %v2010_v26  ;;  %v960_v32 = vmax.f32 %v870_v1, 0.0 }
 0x203   :  { %v875_v28 = vpop.f32.mrf.mxu1 }
 0x204   :  { %v961_v39 = vmax.f32 %v872_v3, 0.0  ;;  %v1000_v9 = vpack.c.bf16 %v960_v32, %v958_v63  ;;  %v876_v62 = vadd.f32 %v875_v28, %v2014_v37  ;;  %v2083_v28 = vld [vmem:[%s2129_s6] ss:$0 sm:$0xff]  ;;  %s1688_s6 = smov [#allocation5]  }
 0x205   :  { %v877_v6 = vpop.f32.mrf.mxu1  ;;  %s1343_s26 = sshll.u32 %s1688_s6, 4  ;;  %s1344_s26 = int_to_ptr.vmem [resolvable:$true] %s1343_s26 }
 0x206   :  { %v1001_v11 = vpack.c.bf16 %v961_v39, %v959_v5  ;;  %v878_v13 = vadd.f32 %v877_v6, %v2010_v26  ;;  %v962_v21 = vmax.f32 %v876_v62, 0.0  ;;  %s1660_s29 = scalar_lea.vmem %s1344_s26, 4096  ;;  %p1665_p6 = scmp.lt.s32.totalorder %s1344_s26, %s1344_s26 }
 0x207   :  { %v879_v12 = vpop.f32.mrf.mxu1  ;;  %p1661_p5 = scmp.ne.s32.totalorder %s1344_s26, %s1660_s29  ;;  %p1666_p7 = scmp.lt.s32.totalorder %s1660_s29, %s1660_s29 }
 0x208   :  { %v880_v14 = vadd.f32 %v879_v12, %v2014_v37  ;;  %1265 = vmatprep.mubr.bf16.mxu0 %v1001_v11  ;;  %v963_v57 = vmax.f32 %v878_v13, 0.0 }
 0x209   :  { %v881_v10 = vpop.f32.mrf.mxu1  ;;  %1266 = vmatmul.mubr.bf16.gmra.mxu0 %v1000_v9  ;;  %p1667_p8 = por %p1666_p7, %p1665_p6 }
 0x20a   :  { %v882_v15 = vadd.f32 %v881_v10, %v2010_v26  ;;  %v964_v16 = vmax.f32 %v880_v14, 0.0 }
 0x20b   :  { %v885_v20 = vpop.f32.mrf.mxu1  ;;  %p1668_p9 = pnand %p1667_p8, %p1661_p5 }
 0x20c   :  { %v965_v18 = vmax.f32 %v882_v15, 0.0  ;;  %v1002_v33 = vpack.c.bf16 %v964_v16, %v962_v21  ;;  %v886_v60 = vadd.f32 %v885_v20, %v2014_v37 }
 0x20d   :  { %v887_v22 = vpop.f32.mrf.mxu1 }
 0x20e   :  { %v1003_v59 = vpack.c.bf16 %v965_v18, %v963_v57  ;;  %v888_v23 = vadd.f32 %v887_v22, %v2010_v26  ;;  %v966_v34 = vmax.f32 %v886_v60, 0.0 }
 0x20f   :  { %v889_v24 = vpop.f32.mrf.mxu1 }
 0x210   :  { %v890_v25 = vadd.f32 %v889_v24, %v2014_v37  ;;  %1273 = vmatprep.mubr.bf16.mxu0 %v1003_v59  ;;  %v967_v7 = vmax.f32 %v888_v23, 0.0 }
 0x211   :  { %v891_v61 = vpop.f32.mrf.mxu1  ;;  %1274 = vmatmul.mubr.bf16.gmra.mxu0 %v1002_v33 }
 0x212   :  { %v892_v29 = vadd.f32 %v891_v61, %v2010_v26  ;;  %v968_v30 = vmax.f32 %v890_v25, 0.0 }
 0x213   :  { %v895_v44 = vpop.f32.mrf.mxu1 }
 0x214   :  { %v969_v31 = vmax.f32 %v892_v29, 0.0  ;;  %v1004_v55 = vpack.c.bf16 %v968_v30, %v966_v34  ;;  %v896_v56 = vadd.f32 %v895_v44, %v2014_v37 }
 0x215   :  { %v897_v35 = vpop.f32.mrf.mxu1 }
 0x216   :  { %v1005_v36 = vpack.c.bf16 %v969_v31, %v967_v7  ;;  %v898_v40 = vadd.f32 %v897_v35, %v2010_v26  ;;  %v970_v43 = vmax.f32 %v896_v56, 0.0 }
 0x217   :  { %v899_v38 = vpop.f32.mrf.mxu1 }
 0x218   :  { %v900_v54 = vadd.f32 %v899_v38, %v2014_v37  ;;  %1281 = vmatprep.mubr.bf16.mxu0 %v1005_v36  ;;  %v971_v45 = vmax.f32 %v898_v40, 0.0 }
 0x219   :  { %v901_v41 = vpop.f32.mrf.mxu1  ;;  %1282 = vmatmul.mubr.bf16.gmra.mxu0 %v1004_v55 }
 0x21a   :  { %v902_v4 = vadd.f32 %v901_v41, %v2010_v26  ;;  %v972_v42 = vmax.f32 %v900_v54, 0.0 }
 0x21b   :  { %v905_v17 = vpop.f32.mrf.mxu1 }
 0x21c   :  { %v973_v19 = vmax.f32 %v902_v4, 0.0  ;;  %v1006_v47 = vpack.c.bf16 %v972_v42, %v970_v43  ;;  %v906_v51 = vadd.f32 %v905_v17, %v2014_v37 }
 0x21d   :  { %v907_v46 = vpop.f32.mrf.mxu1 }
 0x21e   :  { %v1007_v27 = vpack.c.bf16 %v973_v19, %v971_v45  ;;  %v908_v49 = vadd.f32 %v907_v46, %v2010_v26  ;;  %v974_v2 = vmax.f32 %v906_v51, 0.0 }
 0x21f   :  { %v909_v48 = vpop.f32.mrf.mxu1 }
 0x220   :  { %v910_v50 = vadd.f32 %v909_v48, %v2014_v37  ;;  %1289 = vmatprep.mubr.bf16.mxu0 %v1007_v27  ;;  %v975_v0 = vmax.f32 %v908_v49, 0.0 }
 0x221   :  { %v911_v52 = vpop.f32.mrf.mxu1  ;;  %1290 = vmatmul.mubr.bf16.gmra.mxu0 %v1006_v47 }
 0x222   :  { %v912_v53 = vadd.f32 %v911_v52, %v2010_v26  ;;  %v976_v58 = vmax.f32 %v910_v50, 0.0 }
 0x224   :  { %v977_v1 = vmax.f32 %v912_v53, 0.0  ;;  %v1008_v3 = vpack.c.bf16 %v976_v58, %v974_v2 }
 0x226   :  { %v1009_v8 = vpack.c.bf16 %v977_v1, %v975_v0 }
 0x228   :  { %1297 = vmatprep.mubr.bf16.mxu0 %v1009_v8 }
 0x229   :  { %1298 = vmatmul.mubr.bf16.gmra.mxu0 %v1008_v3 }
 0x271   :  { %v1455_v32 = vpop.f32.mrf.mxu0 }
 0x273   :  { %v1456_v5 = vpop.f32.mrf.mxu0 }
 0x274   :  { %v1457_v37 = vadd.f32 %v1456_v5, %v1455_v32 }
 0x275   :  { %v1458_v39 = vpop.f32.mrf.mxu0 }
 0x276   :  { %v1180_v63 = vadd.f32 %v1457_v37, %v2083_v28 }
 0x277   :  { %v1459_v26 = vpop.f32.mrf.mxu0 }
 0x278   :  { %1306 = vst [vmem:[#allocation5] sm:$0xff] %v1180_v63  ;;  %v1460_v6 = vadd.f32 %v1459_v26, %v1458_v39 }
 0x279   :  { %v1461_v11 = vpop.f32.mrf.mxu0 }
 0x27a   :  { %v1183_v9 = vadd.f32 %v1460_v6, %v2083_v28 }
 0x27b   :  { %v1462_v12 = vpop.f32.mrf.mxu0 }
 0x27c   :  { %1307 = vst [vmem:[#allocation5 + $0x8] sm:$0xff] %v1183_v9  ;;  %v1463_v13 = vadd.f32 %v1462_v12, %v1461_v11 }
 0x27d   :  { %v1464_v14 = vpop.f32.mrf.mxu0 }
 0x27e   :  { %v1188_v62 = vadd.f32 %v1463_v13, %v2083_v28 }
 0x27f   :  { %v1465_v10 = vpop.f32.mrf.mxu0 }
 0x280   :  { %1308 = vst [vmem:[#allocation5 + $0x10] sm:$0xff] %v1188_v62  ;;  %v1466_v15 = vadd.f32 %v1465_v10, %v1464_v14 }
 0x281   :  { %v1467_v16 = vpop.f32.mrf.mxu0 }
 0x282   :  { %v1191_v20 = vadd.f32 %v1466_v15, %v2083_v28 }
 0x283   :  { %v1468_v57 = vpop.f32.mrf.mxu0 }
 0x284   :  { %1309 = vst [vmem:[#allocation5 + $0x18] sm:$0xff] %v1191_v20  ;;  %v1469_v18 = vadd.f32 %v1468_v57, %v1467_v16 }
 0x285   :  { %v1470_v21 = vpop.f32.mrf.mxu0 }
 0x286   :  { %v1196_v22 = vadd.f32 %v1469_v18, %v2083_v28 }
 0x287   :  { %v1471_v59 = vpop.f32.mrf.mxu0 }
 0x288   :  { %1310 = vst [vmem:[#allocation5 + $0x20] sm:$0xff] %v1196_v22  ;;  %v1472_v33 = vadd.f32 %v1471_v59, %v1470_v21 }
 0x289   :  { %v1473_v24 = vpop.f32.mrf.mxu0 }
 0x28a   :  { %v1199_v23 = vadd.f32 %v1472_v33, %v2083_v28 }
 0x28b   :  { %v1474_v25 = vpop.f32.mrf.mxu0 }
 0x28c   :  { %1311 = vst [vmem:[#allocation5 + $0x28] sm:$0xff] %v1199_v23  ;;  %v1475_v60 = vadd.f32 %v1474_v25, %v1473_v24 }
 0x28d   :  { %v1476_v61 = vpop.f32.mrf.mxu0 }
 0x28e   :  { %v1204_v29 = vadd.f32 %v1475_v60, %v2083_v28 }
 0x28f   :  { %v1477_v30 = vpop.f32.mrf.mxu0 }
 0x290   :  { %1312 = vst [vmem:[#allocation5 + $0x30] sm:$0xff] %v1204_v29  ;;  %v1478_v44 = vadd.f32 %v1477_v30, %v1476_v61 }
 0x291   :  { %v1479_v7 = vpop.f32.mrf.mxu0 }
 0x292   :  { %v1207_v31 = vadd.f32 %v1478_v44, %v2083_v28 }
 0x293   :  { %v1480_v34 = vpop.f32.mrf.mxu0 }
 0x294   :  { %1313 = vst [vmem:[#allocation5 + $0x38] sm:$0xff] %v1207_v31  ;;  %v1481_v35 = vadd.f32 %v1480_v34, %v1479_v7 }
 0x295   :  { %v1482_v36 = vpop.f32.mrf.mxu0 }
 0x296   :  { %v1212_v55 = vadd.f32 %v1481_v35, %v2083_v28 }
 0x297   :  { %v1483_v38 = vpop.f32.mrf.mxu0 }
 0x298   :  { %1314 = vst [vmem:[#allocation5 + $0x40] sm:$0xff] %v1212_v55  ;;  %v1484_v40 = vadd.f32 %v1483_v38, %v1482_v36 }
 0x299   :  { %v1485_v54 = vpop.f32.mrf.mxu0 }
 0x29a   :  { %v1215_v56 = vadd.f32 %v1484_v40, %v2083_v28 }
 0x29b   :  { %v1486_v41 = vpop.f32.mrf.mxu0 }
 0x29c   :  { %1315 = vst [vmem:[#allocation5 + $0x48] sm:$0xff] %v1215_v56  ;;  %v1487_v4 = vadd.f32 %v1486_v41, %v1485_v54 }
 0x29d   :  { %v1488_v42 = vpop.f32.mrf.mxu0 }
 0x29e   :  { %v1220_v17 = vadd.f32 %v1487_v4, %v2083_v28 }
 0x29f   :  { %v1489_v45 = vpop.f32.mrf.mxu0 }
 0x2a0   :  { %1316 = vst [vmem:[#allocation5 + $0x50] sm:$0xff] %v1220_v17  ;;  %v1490_v19 = vadd.f32 %v1489_v45, %v1488_v42 }
 0x2a1   :  { %v1491_v43 = vpop.f32.mrf.mxu0 }
 0x2a2   :  { %v1223_v46 = vadd.f32 %v1490_v19, %v2083_v28 }
 0x2a3   :  { %v1492_v27 = vpop.f32.mrf.mxu0 }
 0x2a4   :  { %1317 = vst [vmem:[#allocation5 + $0x58] sm:$0xff] %v1223_v46  ;;  %v1493_v47 = vadd.f32 %v1492_v27, %v1491_v43 }
 0x2a5   :  { %v1494_v48 = vpop.f32.mrf.mxu0 }
 0x2a6   :  { %v1228_v49 = vadd.f32 %v1493_v47, %v2083_v28 }
 0x2a7   :  { %v1495_v50 = vpop.f32.mrf.mxu0 }
 0x2a8   :  { %1318 = vst [vmem:[#allocation5 + $0x60] sm:$0xff] %v1228_v49  ;;  %v1496_v51 = vadd.f32 %v1495_v50, %v1494_v48 }
 0x2a9   :  { %v1497_v52 = vpop.f32.mrf.mxu0 }
 0x2aa   :  { %v1231_v53 = vadd.f32 %v1496_v51, %v2083_v28 }
 0x2ab   :  { %v1498_v58 = vpop.f32.mrf.mxu0 }
 0x2ac   :  { %1319 = vst [vmem:[#allocation5 + $0x68] sm:$0xff] %v1231_v53  ;;  %v1499_v0 = vadd.f32 %v1498_v58, %v1497_v52 }
 0x2ad   :  { %v1500_v1 = vpop.f32.mrf.mxu0 }
 0x2ae   :  { %v1236_v2 = vadd.f32 %v1499_v0, %v2083_v28 }
 0x2af   :  { %v1501_v8 = vpop.f32.mrf.mxu0 }
 0x2b0   :  { %1320 = vst [vmem:[#allocation5 + $0x70] sm:$0xff] %v1236_v2  ;;  %v1502_v3 = vadd.f32 %v1501_v8, %v1500_v1 }
 0x2b1   :  { %v1503_v32 = vpop.f32.mrf.mxu0 }
 0x2b2   :  { %v1239_v5 = vadd.f32 %v1502_v3, %v2083_v28 }
 0x2b3   :  { %v1504_v37 = vpop.f32.mrf.mxu0 }
 0x2b4   :  { %1321 = vst [vmem:[#allocation5 + $0x78] sm:$0xff] %v1239_v5  ;;  %v1505_v39 = vadd.f32 %v1504_v37, %v1503_v32 }
 0x2b5   :  { %v1506_v63 = vpop.f32.mrf.mxu0 }
 0x2b6   :  { %v1244_v26 = vadd.f32 %v1505_v39, %v2083_v28 }
 0x2b7   :  { %v1507_v6 = vpop.f32.mrf.mxu0 }
 0x2b8   :  { %1322 = vst [vmem:[#allocation5 + $0x80] sm:$0xff] %v1244_v26  ;;  %v1508_v11 = vadd.f32 %v1507_v6, %v1506_v63 }
 0x2b9   :  { %v1509_v9 = vpop.f32.mrf.mxu0 }
 0x2ba   :  { %v1247_v12 = vadd.f32 %v1508_v11, %v2083_v28 }
 0x2bb   :  { %v1510_v13 = vpop.f32.mrf.mxu0 }
 0x2bc   :  { %1323 = vst [vmem:[#allocation5 + $0x88] sm:$0xff] %v1247_v12  ;;  %v1511_v14 = vadd.f32 %v1510_v13, %v1509_v9 }
 0x2bd   :  { %v1512_v62 = vpop.f32.mrf.mxu0 }
 0x2be   :  { %v1252_v10 = vadd.f32 %v1511_v14, %v2083_v28 }
 0x2bf   :  { %v1513_v15 = vpop.f32.mrf.mxu0 }
 0x2c0   :  { %1324 = vst [vmem:[#allocation5 + $0x90] sm:$0xff] %v1252_v10  ;;  %v1514_v16 = vadd.f32 %v1513_v15, %v1512_v62 }
 0x2c1   :  { %v1515_v20 = vpop.f32.mrf.mxu0 }
 0x2c2   :  { %v1255_v57 = vadd.f32 %v1514_v16, %v2083_v28 }
 0x2c3   :  { %v1516_v18 = vpop.f32.mrf.mxu0 }
 0x2c4   :  { %1325 = vst [vmem:[#allocation5 + $0x98] sm:$0xff] %v1255_v57  ;;  %v1517_v21 = vadd.f32 %v1516_v18, %v1515_v20 }
 0x2c5   :  { %v1518_v22 = vpop.f32.mrf.mxu0 }
 0x2c6   :  { %v1260_v59 = vadd.f32 %v1517_v21, %v2083_v28 }
 0x2c7   :  { %v1519_v33 = vpop.f32.mrf.mxu0 }
 0x2c8   :  { %1326 = vst [vmem:[#allocation5 + $0xa0] sm:$0xff] %v1260_v59  ;;  %v1520_v24 = vadd.f32 %v1519_v33, %v1518_v22 }
 0x2c9   :  { %v1521_v23 = vpop.f32.mrf.mxu0 }
 0x2ca   :  { %v1263_v25 = vadd.f32 %v1520_v24, %v2083_v28 }
 0x2cb   :  { %v1522_v60 = vpop.f32.mrf.mxu0 }
 0x2cc   :  { %1327 = vst [vmem:[#allocation5 + $0xa8] sm:$0xff] %v1263_v25  ;;  %v1523_v61 = vadd.f32 %v1522_v60, %v1521_v23 }
 0x2cd   :  { %v1524_v29 = vpop.f32.mrf.mxu0 }
 0x2ce   :  { %v1268_v30 = vadd.f32 %v1523_v61, %v2083_v28 }
 0x2cf   :  { %v1525_v44 = vpop.f32.mrf.mxu0 }
 0x2d0   :  { %1328 = vst [vmem:[#allocation5 + $0xb0] sm:$0xff] %v1268_v30  ;;  %v1526_v7 = vadd.f32 %v1525_v44, %v1524_v29 }
 0x2d1   :  { %v1527_v31 = vpop.f32.mrf.mxu0 }
 0x2d2   :  { %v1271_v34 = vadd.f32 %v1526_v7, %v2083_v28 }
 0x2d3   :  { %v1528_v35 = vpop.f32.mrf.mxu0 }
 0x2d4   :  { %1329 = vst [vmem:[#allocation5 + $0xb8] sm:$0xff] %v1271_v34  ;;  %v1529_v36 = vadd.f32 %v1528_v35, %v1527_v31 }
 0x2d5   :  { %v1530_v55 = vpop.f32.mrf.mxu0 }
 0x2d6   :  { %v1276_v38 = vadd.f32 %v1529_v36, %v2083_v28 }
 0x2d7   :  { %v1531_v40 = vpop.f32.mrf.mxu0 }
 0x2d8   :  { %1330 = vst [vmem:[#allocation5 + $0xc0] sm:$0xff] %v1276_v38  ;;  %v1532_v54 = vadd.f32 %v1531_v40, %v1530_v55 }
 0x2d9   :  { %v1533_v56 = vpop.f32.mrf.mxu0 }
 0x2da   :  { %v1279_v41 = vadd.f32 %v1532_v54, %v2083_v28 }
 0x2db   :  { %v1534_v4 = vpop.f32.mrf.mxu0 }
 0x2dc   :  { %1331 = vst [vmem:[#allocation5 + $0xc8] sm:$0xff] %v1279_v41  ;;  %v1535_v42 = vadd.f32 %v1534_v4, %v1533_v56 }
 0x2dd   :  { %v1536_v17 = vpop.f32.mrf.mxu0 }
 0x2de   :  { %v1284_v45 = vadd.f32 %v1535_v42, %v2083_v28 }
 0x2df   :  { %v1537_v19 = vpop.f32.mrf.mxu0 }
 0x2e0   :  { %1332 = vst [vmem:[#allocation5 + $0xd0] sm:$0xff] %v1284_v45  ;;  %v1538_v43 = vadd.f32 %v1537_v19, %v1536_v17 }
 0x2e1   :  { %v1539_v46 = vpop.f32.mrf.mxu0 }
 0x2e2   :  { %v1287_v27 = vadd.f32 %v1538_v43, %v2083_v28 }
 0x2e3   :  { %v1540_v47 = vpop.f32.mrf.mxu0 }
 0x2e4   :  { %1333 = vst [vmem:[#allocation5 + $0xd8] sm:$0xff] %v1287_v27  ;;  %v1541_v48 = vadd.f32 %v1540_v47, %v1539_v46 }
 0x2e5   :  { %v1542_v49 = vpop.f32.mrf.mxu0 }
 0x2e6   :  { %v1292_v50 = vadd.f32 %v1541_v48, %v2083_v28 }
 0x2e7   :  { %v1543_v51 = vpop.f32.mrf.mxu0 }
 0x2e8   :  { %1334 = vst [vmem:[#allocation5 + $0xe0] sm:$0xff] %v1292_v50  ;;  %v1544_v52 = vadd.f32 %v1543_v51, %v1542_v49 }
 0x2e9   :  { %v1545_v53 = vpop.f32.mrf.mxu0 }
 0x2ea   :  { %v1295_v58 = vadd.f32 %v1544_v52, %v2083_v28 }
 0x2eb   :  { %v1546_v0 = vpop.f32.mrf.mxu0 }
 0x2ec   :  { %1335 = vst [vmem:[#allocation5 + $0xe8] sm:$0xff] %v1295_v58  ;;  %v1547_v1 = vadd.f32 %v1546_v0, %v1545_v53 }
 0x2ed   :  { %v1548_v2 = vpop.f32.mrf.mxu0 }
 0x2ee   :  { %v1300_v8 = vadd.f32 %v1547_v1, %v2083_v28 }
 0x2ef   :  { %v1549_v3 = vpop.f32.mrf.mxu0 }
 0x2f0   :  { %1336 = vst [vmem:[#allocation5 + $0xf0] sm:$0xff] %v1300_v8  ;;  %v1550_v32 = vadd.f32 %v1549_v3, %v1548_v2 }
 0x2f2   :  { %v1303_v5 = vadd.f32 %v1550_v32, %v2083_v28 }
 0x2f4   :  { %1337 = vst [vmem:[#allocation5 + $0xf8] sm:$0xff] %v1303_v5 }
 0x2f5   :  { %1671 = shalt.err (!%p1668_p9)
}
 0x2f6   :  { %1349 = dma.vmem_to_hbm [thread:$0]  %s1344_s26, 4096, %s2130_s7, [#allocation4], %s1685_s27, %s1685_s27, %s1686_s28  }
 0x2f7   :  { %1682 = dma.done.wait [#allocation4], 4096  }
 0x2f8   :  { %1683 = vsyncadd [#allocation4], 4294963200 }
 0x2f9   :  { %1353 = vsyncpa [#allocation3], 1 }
 0x2fa   :  { %1354 = vsyncpa [#allocation4], 1 }

</bundles_post_ra>
